<compile_context>
chip_gen: v7x
topology: tpu7x:2x2x1
jax: 0.10.0
libtpu: 0.0.40
codegen_flags: <defaults>
</compile_context>

<pallas_src>
import math

import jax
import jax.numpy as jnp
from jax import lax
from jax.experimental import pallas as pl
from jax.experimental.pallas import tpu as pltpu

_EPS = 1e-12          # F.normalize default eps
_EPS2 = _EPS * _EPS   # clamp applied to the squared norm (representable in f32)

_F32_BYTES = 4
# Budget for the pipeline tiles (x, W, out; double-buffered).  Kept well under
# v7x's 64 MiB physical VMEM and v5e/v6e's 128 MiB.
_VMEM_TILE_BUDGET = 40 * 1024 * 1024
# Explicit scoped-VMEM limit: covers the tile budget + compiler scratch, and
# overrides v5e's 16 MiB default so double buffering is not silently shrunk.
_VMEM_LIMIT_BYTES = 48 * 1024 * 1024


def _arc_margin_kernel(x_ref, w_ref, o_ref):
    x = x_ref[...]   # (tb, K) f32
    w = w_ref[...]   # (tn, K) f32

    # 1 / max(||row||, eps) == rsqrt(max(||row||^2, eps^2)); rsqrt uses the EUP.
    inv_x = lax.rsqrt(jnp.maximum(jnp.sum(x * x, axis=1, keepdims=True), _EPS2))  # (tb, 1)
    inv_w = lax.rsqrt(jnp.maximum(jnp.sum(w * w, axis=1, keepdims=True), _EPS2))  # (tn, 1)

    # raw = x @ w^T without materializing a transposed weight tile.
    raw = lax.dot_general(
        x, w,
        dimension_numbers=(((1,), (1,)), ((), ())),
        preferred_element_type=jnp.float32,
    )  # (tb, tn)

    o_ref[...] = (raw * inv_x * inv_w.T).astype(o_ref.dtype)


def _pick_tiles(B, K, N, max_block_b, max_block_n):
    """Choose (tb, tn) under the VMEM tile budget, preferring large tb."""
    # Batch tile: cover the whole batch whenever its double-buffered stripe
    # fits in half the budget -> W is read from HBM exactly once.
    x_budget = _VMEM_TILE_BUDGET // 2
    tb_cap = max(8, (x_budget // (2 * K * _F32_BYTES)) // 8 * 8)
    if max_block_b is not None:
        tb_cap = min(tb_cap, max(8, (max_block_b // 8) * 8))
    tb = B if B <= tb_cap else tb_cap

    # Class tile: remaining budget covers the streamed W tile and the
    # lane-dense output tile (both double-buffered).  Cap at 2048: the
    # ~0.35us per-grid-step overhead is fully amortized well before that.
    rem = _VMEM_TILE_BUDGET - 2 * tb * K * _F32_BYTES
    tn_cap = rem // (2 * (K + tb) * _F32_BYTES)
    tn_cap = max(128, (tn_cap // 128) * 128)
    tn_cap = min(tn_cap, 2048)
    if max_block_n is not None:
        tn_cap = min(tn_cap, max(128, (max_block_n // 128) * 128))
    tn = N if N <= tn_cap else tn_cap
    return tb, tn


def arc_margin_product(features: jax.Array, weight: jax.Array,
                       *, block_b: int | None = None,
                       block_n: int | None = None) -> jax.Array:
    """features: (B, in_features); weight: (out_features, in_features)."""
    B, K = features.shape
    N, Kw = weight.shape
    assert K == Kw, "in_features mismatch"

    x = features.astype(jnp.float32)
    w = weight.astype(jnp.float32)

    tb, tn = _pick_tiles(B, K, N, block_b, block_n)
    grid = (pl.cdiv(B, tb), pl.cdiv(N, tn))

    return pl.pallas_call(
        _arc_margin_kernel,
        out_shape=jax.ShapeDtypeStruct((B, N), jnp.float32),
        grid_spec=pl.GridSpec(
            grid=grid,
            in_specs=[
                # x tile: constant across the inner N axis -> stays resident,
                # fetched once per B-tile.
                pl.BlockSpec((tb, K), lambda i, j: (i, 0)),
                # W tile: streamed over N, double-buffered by Pallas.
                pl.BlockSpec((tn, K), lambda i, j: (j, 0)),
            ],
            out_specs=pl.BlockSpec((tb, tn), lambda i, j: (i, j)),
        ),
        compiler_params=pltpu.CompilerParams(
            # Typical shapes give grid_B == 1, so megacore splits the class
            # axis: each TensorCore streams a disjoint slice of W.
            dimension_semantics=("parallel", "parallel"),
            vmem_limit_bytes=_VMEM_LIMIT_BYTES,
        ),
    )(x, w)


def _reference(features, weight):
    xn = features / jnp.maximum(
        jnp.linalg.norm(features, axis=1, keepdims=True), _EPS)
    wn = weight / jnp.maximum(
        jnp.linalg.norm(weight, axis=1, keepdims=True), _EPS)
    # HIGHEST so the XLA reference matmul is true f32 (default TPU precision
    # would otherwise compare a bf16-ish matmul against the f32 kernel).
    return jnp.dot(xn, wn.T, precision=jax.lax.Precision.HIGHEST)


if __name__ == "__main__":
    key = jax.random.PRNGKey(0)
    k_feat, k_w = jax.random.split(key)

    # Case 1: small shapes consistent with the module's forward.
    batch, in_features, out_features = 8, 32, 16
    features = jax.random.normal(k_feat, (batch, in_features), dtype=jnp.float32)
    # Deterministic init mirroring reset_parameters(): uniform(-stdv, stdv).
    stdv = 1.0 / math.sqrt(in_features)
    weight = jax.random.uniform(
        k_w, (out_features, in_features), dtype=jnp.float32,
        minval=-stdv, maxval=stdv)

    cosine = jax.block_until_ready(arc_margin_product(features, weight))
    ref = _reference(features, weight)
    assert cosine.shape == (batch, out_features)
    assert jnp.allclose(cosine, ref, atol=1e-4, rtol=1e-4), "mismatch vs reference (case 1)"

    # Case 2: non-aligned shapes -> multi-tile grid with ragged edge blocks on
    # both axes (no HBM padding of W, no output slicing).
    b2, k2, n2 = 24, 96, 200
    ka, kb = jax.random.split(jax.random.PRNGKey(1))
    f2 = jax.random.normal(ka, (b2, k2), dtype=jnp.float32)
    stdv2 = 1.0 / math.sqrt(k2)
    w2 = jax.random.uniform(kb, (n2, k2), dtype=jnp.float32, minval=-stdv2, maxval=stdv2)

    c2 = jax.block_until_ready(arc_margin_product(f2, w2, block_b=16, block_n=128))
    r2 = _reference(f2, w2)
    assert c2.shape == (b2, n2)
    assert jnp.allclose(c2, r2, atol=1e-4, rtol=1e-4), "mismatch vs reference (case 2)"

    print("KERNEL_OK")
</pallas_src>

<mosaic_0001>
module attributes {stable_mosaic.version = 11 : i64} {
  func.func @_arc_margin_kernel(%arg0: i32, %arg1: i32, %arg2: memref<8x32xf32, #tpu.memory_space<vmem>>, %arg3: memref<16x32xf32, #tpu.memory_space<vmem>>, %arg4: memref<8x16xf32, #tpu.memory_space<vmem>>) attributes {dimension_semantics = [#tpu.dimension_semantics<parallel>, #tpu.dimension_semantics<parallel>], iteration_bounds = array<i64: 1, 1>, scalar_prefetch = 0 : i64, scratch_operands = 0 : i64, tpu.core_type = #tpu.core_type<tc>, window_params = [{transform_indices = @transform_0, window_bounds = array<i64: 8, 32>}, {transform_indices = @transform_1, window_bounds = array<i64: 16, 32>}, {transform_indices = @transform_2, window_bounds = array<i64: 8, 16>}]} {
    %c0 = arith.constant 0 : index
    %c0_0 = arith.constant 0 : index
    %0 = vector.load %arg2[%c0, %c0_0] : memref<8x32xf32, #tpu.memory_space<vmem>>, vector<8x32xf32>
    %c0_1 = arith.constant 0 : index
    %c0_2 = arith.constant 0 : index
    %1 = vector.load %arg3[%c0_1, %c0_2] : memref<16x32xf32, #tpu.memory_space<vmem>>, vector<16x32xf32>
    %2 = arith.mulf %0, %0 : vector<8x32xf32>
    %cst = arith.constant dense<0.000000e+00> : vector<8xf32>
    %3 = vector.multi_reduction <add>, %2, %cst [1] : vector<8x32xf32> to vector<8xf32>
    %4 = vector.shape_cast %3 : vector<8xf32> to vector<8x1xf32>
    %cst_3 = arith.constant 1.000000e-24 : f32
    %5 = vector.broadcast %cst_3 : f32 to vector<8x1xf32>
    %6 = arith.maximumf %4, %5 : vector<8x1xf32>
    %7 = math.rsqrt %6 : vector<8x1xf32>
    %8 = arith.mulf %1, %1 : vector<16x32xf32>
    %cst_4 = arith.constant dense<0.000000e+00> : vector<16xf32>
    %9 = vector.multi_reduction <add>, %8, %cst_4 [1] : vector<16x32xf32> to vector<16xf32>
    %10 = vector.shape_cast %9 : vector<16xf32> to vector<16x1xf32>
    %cst_5 = arith.constant 1.000000e-24 : f32
    %11 = vector.broadcast %cst_5 : f32 to vector<16x1xf32>
    %12 = arith.maximumf %10, %11 : vector<16x1xf32>
    %13 = math.rsqrt %12 : vector<16x1xf32>
    %cst_6 = arith.constant dense<0.000000e+00> : vector<8x16xf32>
    %14 = tpu.matmul %0, %1, %cst_6 {dimension_numbers = #tpu.dot_dimension_numbers<[1], [1], [0], [0], [0, 0, 1, 0], [], []>} : vector<8x32xf32>, vector<16x32xf32>, vector<8x16xf32> -> vector<8x16xf32>
    %15 = vector.broadcast %7 : vector<8x1xf32> to vector<8x16xf32>
    %16 = arith.mulf %14, %15 : vector<8x16xf32>
    %17 = tpu.transpose %13, [1, 0] : vector<16x1xf32> -> vector<1x16xf32>
    %18 = vector.broadcast %17 : vector<1x16xf32> to vector<8x16xf32>
    %19 = arith.mulf %16, %18 : vector<8x16xf32>
    %c0_7 = arith.constant 0 : index
    %c0_8 = arith.constant 0 : index
    %20 = vector.load %arg4[%c0_7, %c0_8] : memref<8x16xf32, #tpu.memory_space<vmem>>, vector<8x16xf32>
    tpu.vector_store %arg4[%c0_7, %c0_8], %19 {strides = array<i32>} : memref<8x16xf32, #tpu.memory_space<vmem>>, vector<8x16xf32>,
    return
  }
  func.func @transform_0(%arg0: i32, %arg1: i32) -> (i32, i32) {
    %c0_i32 = arith.constant 0 : i32
    %c0_i32_0 = arith.constant 0 : i32
    return %arg0, %c0_i32 : i32, i32
  }
  func.func @transform_1(%arg0: i32, %arg1: i32) -> (i32, i32) {
    %c0_i32 = arith.constant 0 : i32
    %c0_i32_0 = arith.constant 0 : i32
    return %arg1, %c0_i32 : i32, i32
  }
  func.func @transform_2(%arg0: i32, %arg1: i32) -> (i32, i32) {
    %c0_i32 = arith.constant 0 : i32
    return %arg0, %arg1 : i32, i32
  }
}

</mosaic_0001>

<bundles_post_ra>
// kernel: tpu_custom_call.1
= control target key start
LH: loop header
LB: loop body
LE: loop exit
PB: predicated region body
PF: predicated region fallthrough
CT: control target
= control target key end

     0   :  { %7 = vsyncpa [#allocation3], 0  ;;  %s370_s0 = inlined_call_operand.hbm [shape: f32[8,32], index: 0, kind: input, shape index: {}]   ;;  %s371_s1 = inlined_call_operand.hbm [shape: f32[16,32], index: 1, kind: input, shape index: {}]   ;;  %s372_s2 = inlined_call_operand.hbm [shape: f32[8,16], index: 2, kind: output, shape index: {}]  }
   0x1   :  { %8 = vsyncpa [#allocation6], 0 }
   0x2   :  { %9 = vsyncpa [#allocation4], 0  ;;  %s298_s9 = smov [#allocation2]   ;;  %s299_s11 = smov [#allocation5]  }
   0x3   :  { %s16_s10 = sshll.u32 %s298_s9, 4  ;;  %s25_s12 = sshll.u32 %s299_s11, 4  ;;  %s17_s10 = int_to_ptr.vmem [resolvable:$true] %s16_s10  ;;  %s321_s12 = int_to_ptr.vmem [resolvable:$true] %s25_s12 }
   0x4   :  { %s226_s15 = scalar_lea.hbm %s370_s0, 128 }
   0x5   :  { %p227_p0 = scmp.ne.s32.totalorder %s370_s0, %s226_s15  ;;  %p230_p1 = scmp.lt.u32.totalorder %s226_s15, %s370_s0 }
   0x7   :  { %p232_p2 = pnand %p230_p1, %p227_p0 }
   0x9   :  { %235 = shalt.err (!%p232_p2)
}
   0xa   :  { %s236_s20 = scalar_lea.vmem %s17_s10, 128  ;;  %p241_p4 = scmp.lt.s32.totalorder %s17_s10, %s17_s10 }
   0xb   :  { %p237_p3 = scmp.ne.s32.totalorder %s17_s10, %s236_s20  ;;  %p242_p5 = scmp.lt.s32.totalorder %s236_s20, %s236_s20 }
   0xd   :  { %p243_p6 = por %p242_p5, %p241_p4 }
   0xf   :  { %p244_p7 = pnand %p243_p6, %p237_p3 }
  0x11   :  { %247 = shalt.err (!%p244_p7)
}
  0x12   :  { %19 = dma.hbm_to_vmem [thread:$0]  %s370_s0, 128, %s17_s10, [#allocation3]  }
  0x13   :  { %s248_s25 = scalar_lea.hbm %s371_s1, 256 }
  0x14   :  { %p249_p8 = scmp.ne.s32.totalorder %s371_s1, %s248_s25  ;;  %p252_p9 = scmp.lt.u32.totalorder %s248_s25, %s371_s1 }
  0x16   :  { %p254_p10 = pnand %p252_p9, %p249_p8 }
  0x18   :  { %257 = shalt.err (!%p254_p10)
}
  0x19   :  { %s258_s30 = scalar_lea.vmem %s321_s12, 256  ;;  %p263_p12 = scmp.lt.s32.totalorder %s321_s12, %s321_s12 }
  0x1a   :  { %p259_p11 = scmp.ne.s32.totalorder %s321_s12, %s258_s30  ;;  %p264_p13 = scmp.lt.s32.totalorder %s258_s30, %s258_s30 }
  0x1c   :  { %p265_p0 = por %p264_p13, %p263_p12 }
  0x1e   :  { %p266_p1 = pnand %p265_p0, %p259_p11 }
  0x20   :  { %269 = shalt.err (!%p266_p1)
}
  0x21   :  { %s300_s0 = smov 128   ;;  %s301_s3 = smov 8  }
  0x22   :  { %31 = dma.hbm_to_vmem [thread:$0]  %s371_s1, 256, %s321_s12, [#allocation6], %s300_s0, %s300_s0, %s301_s3  }
  0x23   :  { %292 = dma.done.wait [#allocation3], 128  }
  0x24   :  { %293 = vsyncadd [#allocation3], 4294967168 }
  0x25   :  { %294 = dma.done.wait [#allocation6], 256  }
  0x26   :  { %295 = vsyncadd [#allocation6], 4294967040  ;;  %v302_v0 = vmov 0.0|0.0   ;;  %vm303_vm0 = vmmov 0   ;;  %v304_v1 = vmov 0.0   ;;  %vm42_vm1 = vcmask 261120  }
  0x27   :  { %208 = vmatprep.subr.bf16.mxu0 %v302_v0  ;;  %205 = vmatprep.mubr.msk.f32.mxu0 %vm303_vm0, %v304_v1  ;;  %vm210_vm2 = vmpackc.low %vm42_vm1, %vm42_vm1  ;;  %v39_v2 = vld [vmem:[#allocation5] sm:$0xff]  ;;  %v40_v3 = vld [vmem:[#allocation5 + $0x8] sm:$0xff]  ;;  %v172_v22 = vlaneseq  ;;  %s305_s1 = smov [#allocation7]   ;;  %vm177_vm3 = vcmask 130048  }
  0x28   :  { %v38_v4 = vld [vmem:[#allocation2] sm:$0xff]  ;;  %v48_v5 = vmul.f32 %v39_v2, %v39_v2  ;;  %v49_v6 = vmul.f32 %v40_v3, %v40_v3  ;;  %v209_v7 = vpack.c.bf16 %v40_v3, %v39_v2  ;;  %s185_s6 = sshll.u32 %s305_s1, 4  ;;  %s186_s6 = int_to_ptr.vmem [resolvable:$true] %s185_s6 }
  0x29   :  { %v41_v8 = vmul.f32 %v38_v4, %v38_v4  ;;  %v173_v23 = vshrl.u32 %v172_v22, 7  ;;  %s270_s7 = scalar_lea.vmem %s186_s6, 128  ;;  %p275_p3 = scmp.lt.s32.totalorder %s186_s6, %s186_s6 }
  0x2a   :  { %v50_v9 = vsel %vm42_vm1, %v48_v5, 0.0  ;;  %211 = vmatpush3.bf16.xpose.msk.msra.mxu0 %vm210_vm2, %v209_v7  ;;  %v53_v11 = vsel %vm42_vm1, %v49_v6, 0.0  ;;  %p271_p2 = scmp.ne.s32.totalorder %s186_s6, %s270_s7  ;;  %p276_p4 = scmp.lt.s32.totalorder %s270_s7, %s270_s7 }
  0x2b   :  { %v43_v10 = vsel %vm42_vm1, %v41_v8, 0.0  ;;  %51 = vadd.xlane.f32.xlu0 %v50_v9  ;;  %v174_v24 = vsub.s32 0, %v173_v23 }
  0x2c   :  { %44 = vadd.xlane.f32.xlu1 %v43_v10  ;;  %p277_p5 = por %p276_p4, %p275_p3 }
  0x2e   :  { %p278_p6 = pnand %p277_p5, %p271_p2 }
  0x2f   :  { %54 = vadd.xlane.f32.xlu0 %v53_v11 }
  0x31   :  { %206 = vmatmul.mubr.msk.f32.vlgmr.msra.gmra.mrb[0].mxu0 %vm42_vm1, %v38_v4 }
  0xb8   :  { %v52_v12 = vpop.xlane.xlu0 %51 }
  0xb9   :  { %v56_v13 = vmax.f32 %v52_v12, 1e-24  ;;  %v45_v20 = vpop.xlane.xlu1 %44 }
  0xba   :  { %v46_v21 = vmax.f32 %v45_v20, 1e-24 }
  0xbb   :  { %220 = vrsqrt.f32 %v56_v13 }
  0xbc   :  { %v55_v14 = vpop.xlane.xlu0 %54 }
  0xbd   :  { %v57_v15 = vmax.f32 %v55_v14, 1e-24 }
  0xbf   :  { %222 = vrsqrt.f32 %v57_v15 }
  0xc0   :  { %224 = vrsqrt.f32 %v46_v21 }
  0xc5   :  { %v221_v16 = vpop.eup %220 }
  0xc6   :  { %140 = vxpose.xlu1.b32.start [1/2] (short) (narrow) %v221_v16, 8 }
  0xc9   :  { %v223_v17 = vpop.eup %222 }
  0xca   :  { %141 = vxpose.xlu1.b32.end [2/2] (short) (narrow) %v223_v17, 8  ;;  %v225_v25 = vpop.eup %224 }
 0x104   :  { %v135_v18 = vpop.f32.mrb[0].mxu0 }
 0x105   :  { %v207_v19 = vpop.f32.mrb[1].mxu0  ;;  %v139_v27 = vmul.f32 %v225_v25, %v135_v18 }
 0x146   :  { %v156_v26 = vpop.trf.xlu1 }
 0x147   :  { %v175_v28 = vrot.slane %v156_v26, %v174_v24 }
 0x149   :  { %v176_v29 = vmul.f32 %v175_v28, %v139_v27 }
 0x14b   :  { %178 = vst.msk [vmem:[#allocation7] sm:$0xff] %vm177_vm3, %v176_v29 }
 0x14c   :  { %281 = shalt.err (!%p278_p6)
}
 0x14d   :  { %s282_s10 = scalar_lea.hbm %s372_s2, 128 }
 0x14e   :  { %p283_p7 = scmp.ne.s32.totalorder %s372_s2, %s282_s10  ;;  %p286_p8 = scmp.lt.u32.totalorder %s282_s10, %s372_s2 }
 0x150   :  { %p288_p9 = pnand %p286_p8, %p283_p7 }
 0x152   :  { %291 = shalt.err (!%p288_p9)
}
 0x153   :  { %188 = dma.vmem_to_hbm [thread:$0]  %s186_s6, 128, %s372_s2, [#allocation4]  }
 0x154   :  { %296 = dma.done.wait [#allocation4], 128  }
 0x155   :  { %297 = vsyncadd [#allocation4], 4294967168 }
 0x156   :  { %192 = vsyncpa [#allocation3], 1 }
 0x157   :  { %193 = vsyncpa [#allocation6], 1 }
 0x158   :  { %194 = vsyncpa [#allocation4], 1 }

</bundles_post_ra>
